<compile_context>
chip_gen: v7x
topology: tpu7x:2x2x1
jax: 0.10.0
libtpu: 0.0.40
codegen_flags: <defaults>
</compile_context>

<pallas_src>
import jax
import jax.numpy as jnp
from jax.experimental import pallas as pl
from jax.experimental.pallas import tpu as pltpu


def _gru_encoder_kernel(tok_ref,   # SMEM (L,) int32  scalar-prefetch (drives index_maps)
                        emb_ref,   # (1, 1, H) bf16   gathered embedding row for step t
                        h0_ref,    # (1, H)   f32     initial hidden
                        wih_ref,   # (H, 3H)  bf16    W_ih^T
                        whh_ref,   # (H, 3H)  bf16    W_hh^T
                        bih_ref,   # (1, 3H)  f32
                        bhh_ref,   # (1, 3H)  f32
                        out_ref,   # (1, 1, H) f32    per-step GRU output
                        h_scr):    # VMEM (1, H) f32  hidden carry across grid steps
    del tok_ref  # only used by the BlockSpec index_maps
    t = pl.program_id(0)
    hdim = h0_ref.shape[-1]

    @pl.when(t == 0)
    def _():
        h_scr[...] = h0_ref[...]

    x = emb_ref[0]                     # (1, H) bf16
    h = h_scr[...]                     # (1, H) f32

    # Input / hidden projections on the MXU (f32 accumulate).
    gi = jnp.dot(x, wih_ref[...], preferred_element_type=jnp.float32) + bih_ref[...]
    gh = jnp.dot(h.astype(whh_ref.dtype), whh_ref[...],
                 preferred_element_type=jnp.float32) + bhh_ref[...]

    i_r, i_z, i_n = gi[:, :hdim], gi[:, hdim:2 * hdim], gi[:, 2 * hdim:]
    h_r, h_z, h_n = gh[:, :hdim], gh[:, hdim:2 * hdim], gh[:, 2 * hdim:]

    r = jax.nn.sigmoid(i_r + h_r)
    z = jax.nn.sigmoid(i_z + h_z)
    n = jnp.tanh(i_n + r * h_n)
    h_new = (1.0 - z) * n + z * h

    h_scr[...] = h_new
    out_ref[0] = h_new.astype(out_ref.dtype)


def encoder_forward(tokens, hidden, params):
    """tokens: (L,) int32; hidden: (1, 1, H) f32.

    Returns (output (L, 1, H) f32, hidden (1, 1, H) f32), matching
    torch.nn.GRU(seq_len=L, batch=1) semantics.  L == 1 reproduces the
    original Encoder.forward exactly.
    """
    emb = params["embedding"]          # (V, H)  bf16
    w_ih_t = params["w_ih_t"]          # (H, 3H) bf16
    w_hh_t = params["w_hh_t"]          # (H, 3H) bf16
    b_ih = params["b_ih"]              # (1, 3H) f32
    b_hh = params["b_hh"]              # (1, 3H) f32

    V, H = emb.shape
    L = tokens.shape[0]

    emb3 = emb.reshape(V, 1, H)                       # free bitcast reshape
    h0 = hidden.reshape(1, H).astype(jnp.float32)

    const = lambda shape: pl.BlockSpec(shape, lambda t, tok: (0, 0))

    out = pl.pallas_call(
        _gru_encoder_kernel,
        out_shape=jax.ShapeDtypeStruct((L, 1, H), jnp.float32),
        grid_spec=pltpu.PrefetchScalarGridSpec(
            num_scalar_prefetch=1,
            grid=(L,),
            in_specs=[
                # Row gather driven by the prefetched token ids; clamp for safety.
                pl.BlockSpec((1, 1, H),
                             lambda t, tok: (jnp.clip(tok[t], 0, V - 1), 0, 0)),
                const((1, H)),          # h0          (resident)
                const((H, 3 * H)),      # W_ih^T      (resident)
                const((H, 3 * H)),      # W_hh^T      (resident)
                const((1, 3 * H)),      # b_ih        (resident)
                const((1, 3 * H)),      # b_hh        (resident)
            ],
            out_specs=pl.BlockSpec((1, 1, H), lambda t, tok: (t, 0, 0)),
            scratch_shapes=[pltpu.VMEM((1, H), jnp.float32)],
        ),
        compiler_params=pltpu.CompilerParams(
            dimension_semantics=("arbitrary",),        # serial recurrence
            vmem_limit_bytes=32 * 1024 * 1024),
    )(tokens.astype(jnp.int32), emb3, h0, w_ih_t, w_hh_t, b_ih, b_hh)

    output = out                                       # (L, 1, H)
    new_hidden = out[L - 1:].reshape(1, 1, H)          # last step == final hidden
    return output, new_hidden


def init_params(key, input_size, hidden_size):
    """Parameter init matching the PyTorch module's shapes (weights in bf16)."""
    k_emb, k_wih, k_whh, k_bih, k_bhh = jax.random.split(key, 5)
    bound = 1.0 / jnp.sqrt(hidden_size)
    # nn.Embedding default init: N(0, 1)
    emb = jax.random.normal(k_emb, (input_size, hidden_size), jnp.float32)
    # nn.GRU default init: U(-1/sqrt(H), 1/sqrt(H)); stored transposed (in, 3H).
    w_ih_t = jax.random.uniform(k_wih, (hidden_size, 3 * hidden_size),
                                jnp.float32, -bound, bound)
    w_hh_t = jax.random.uniform(k_whh, (hidden_size, 3 * hidden_size),
                                jnp.float32, -bound, bound)
    b_ih = jax.random.uniform(k_bih, (1, 3 * hidden_size), jnp.float32, -bound, bound)
    b_hh = jax.random.uniform(k_bhh, (1, 3 * hidden_size), jnp.float32, -bound, bound)
    return dict(embedding=emb.astype(jnp.bfloat16),
                w_ih_t=w_ih_t.astype(jnp.bfloat16),
                w_hh_t=w_hh_t.astype(jnp.bfloat16),
                b_ih=b_ih, b_hh=b_hh)


def encoder_reference(tokens, hidden, params):
    """Pure-JAX reference of the same GRU sequence (torch gate order r, z, n)."""
    H = params["embedding"].shape[1]
    h = hidden.reshape(1, H).astype(jnp.float32)
    wih, whh = params["w_ih_t"], params["w_hh_t"]
    bih, bhh = params["b_ih"], params["b_hh"]
    outs = []
    for i in range(tokens.shape[0]):
        x = params["embedding"][tokens[i]].reshape(1, H)
        gi = jnp.dot(x, wih, preferred_element_type=jnp.float32) + bih
        gh = jnp.dot(h.astype(whh.dtype), whh, preferred_element_type=jnp.float32) + bhh
        i_r, i_z, i_n = gi[:, :H], gi[:, H:2 * H], gi[:, 2 * H:]
        h_r, h_z, h_n = gh[:, :H], gh[:, H:2 * H], gh[:, 2 * H:]
        r = jax.nn.sigmoid(i_r + h_r)
        z = jax.nn.sigmoid(i_z + h_z)
        n = jnp.tanh(i_n + r * h_n)
        h = (1.0 - z) * n + z * h
        outs.append(h)
    output = jnp.stack(outs, axis=0).reshape(tokens.shape[0], 1, H)
    return output, h.reshape(1, 1, H)


if __name__ == "__main__":
    INPUT_SIZE = 64    # vocabulary size (small, synthetic)
    HIDDEN_SIZE = 128  # lane-aligned stand-in for hidden_size=256
    SEQ_LEN = 8

    key = jax.random.PRNGKey(0)
    k_params, k_tok, k_hid = jax.random.split(key, 3)

    params = init_params(k_params, INPUT_SIZE, HIDDEN_SIZE)
    tokens = jax.random.randint(k_tok, (SEQ_LEN,), 0, INPUT_SIZE, dtype=jnp.int32)
    hidden = jax.random.normal(k_hid, (1, 1, HIDDEN_SIZE), jnp.float32)

    fwd = jax.jit(encoder_forward)

    # Full-sequence run (one pallas_call for all 8 tokens).
    output, new_hidden = fwd(tokens, hidden, params)
    jax.block_until_ready((output, new_hidden))
    ref_out, ref_hid = encoder_reference(tokens, hidden, params)
    assert output.shape == (SEQ_LEN, 1, HIDDEN_SIZE)
    assert new_hidden.shape == (1, 1, HIDDEN_SIZE)
    assert jnp.allclose(output, ref_out, atol=1e-3, rtol=1e-3), "output mismatch vs reference"
    assert jnp.allclose(new_hidden, ref_hid, atol=1e-3, rtol=1e-3), "hidden mismatch vs reference"

    # Single-token run: exact semantics of Encoder.forward (output == hidden).
    out1, hid1 = fwd(tokens[:1], hidden, params)
    jax.block_until_ready((out1, hid1))
    ref_out1, ref_hid1 = encoder_reference(tokens[:1], hidden, params)
    assert out1.shape == (1, 1, HIDDEN_SIZE) and hid1.shape == (1, 1, HIDDEN_SIZE)
    assert jnp.allclose(out1, ref_out1, atol=1e-3, rtol=1e-3)
    assert jnp.allclose(hid1, ref_hid1, atol=1e-3, rtol=1e-3)
    assert jnp.allclose(out1.reshape(1, -1), hid1.reshape(1, -1))

    print("KERNEL_OK")
</pallas_src>

<mosaic_0001>
module attributes {stable_mosaic.version = 11 : i64} {
  func.func @_gru_encoder_kernel(%arg0: i32, %arg1: memref<8xi32, #tpu.memory_space<smem>>, %arg2: memref<1x1x128xbf16, #tpu.memory_space<vmem>>, %arg3: memref<1x128xf32, #tpu.memory_space<vmem>>, %arg4: memref<128x384xbf16, #tpu.memory_space<vmem>>, %arg5: memref<128x384xbf16, #tpu.memory_space<vmem>>, %arg6: memref<1x384xf32, #tpu.memory_space<vmem>>, %arg7: memref<1x384xf32, #tpu.memory_space<vmem>>, %arg8: memref<1x1x128xf32, #tpu.memory_space<vmem>>, %arg9: memref<1x128xf32, #tpu.memory_space<vmem>>) attributes {dimension_semantics = [#tpu.dimension_semantics<arbitrary>], iteration_bounds = array<i64: 8>, scalar_prefetch = 1 : i64, scratch_operands = 1 : i64, tpu.core_type = #tpu.core_type<tc>, window_params = [{transform_indices = @transform_0, window_bounds = array<i64: 1, 1, 128>}, {pipeline_mode = #tpu.pipeline_mode<synchronous>, transform_indices = @transform_1, window_bounds = array<i64: 1, 128>}, {pipeline_mode = #tpu.pipeline_mode<synchronous>, transform_indices = @transform_2, window_bounds = array<i64: 128, 384>}, {pipeline_mode = #tpu.pipeline_mode<synchronous>, transform_indices = @transform_3, window_bounds = array<i64: 128, 384>}, {pipeline_mode = #tpu.pipeline_mode<synchronous>, transform_indices = @transform_4, window_bounds = array<i64: 1, 384>}, {pipeline_mode = #tpu.pipeline_mode<synchronous>, transform_indices = @transform_5, window_bounds = array<i64: 1, 384>}, {transform_indices = @transform_6, window_bounds = array<i64: 1, 1, 128>}]} {
    %c0_i32 = arith.constant 0 : i32
    %0 = arith.cmpi eq, %arg0, %c0_i32 : i32
    %1 = arith.extui %0 : i1 to i32
    %c0_i32_0 = arith.constant 0 : i32
    %2 = arith.cmpi ne, %1, %c0_i32_0 : i32
    scf.if %2 {
      %c0_22 = arith.constant 0 : index
      %c0_23 = arith.constant 0 : index
      %45 = vector.load %arg3[%c0_22, %c0_23] : memref<1x128xf32, #tpu.memory_space<vmem>>, vector<1x128xf32>
      %c0_24 = arith.constant 0 : index
      %c0_25 = arith.constant 0 : index
      %46 = vector.load %arg9[%c0_24, %c0_25] : memref<1x128xf32, #tpu.memory_space<vmem>>, vector<1x128xf32>
      tpu.vector_store %arg9[%c0_24, %c0_25], %45 {strides = array<i32>} : memref<1x128xf32, #tpu.memory_space<vmem>>, vector<1x128xf32>,
    } else {
    }
    %c0 = arith.constant 0 : index
    %c0_1 = arith.constant 0 : index
    %c0_2 = arith.constant 0 : index
    %3 = vector.load %arg2[%c0, %c0_1, %c0_2] : memref<1x1x128xbf16, #tpu.memory_space<vmem>>, vector<1x1x128xbf16>
    %4 = vector.shape_cast %3 : vector<1x1x128xbf16> to vector<1x128xbf16>
    %c0_3 = arith.constant 0 : index
    %c0_4 = arith.constant 0 : index
    %5 = vector.load %arg9[%c0_3, %c0_4] : memref<1x128xf32, #tpu.memory_space<vmem>>, vector<1x128xf32>
    %c0_5 = arith.constant 0 : index
    %c0_6 = arith.constant 0 : index
    %6 = vector.load %arg4[%c0_5, %c0_6] : memref<128x384xbf16, #tpu.memory_space<vmem>>, vector<128x384xbf16>
    %cst = arith.constant dense<0.000000e+00> : vector<1x384xf32>
    %7 = tpu.matmul %4, %6, %cst {dimension_numbers = #tpu.dot_dimension_numbers<[1], [0], [0], [1], [0, 0, 1, 1], [], []>} : vector<1x128xbf16>, vector<128x384xbf16>, vector<1x384xf32> -> vector<1x384xf32>
    %c0_7 = arith.constant 0 : index
    %c0_8 = arith.constant 0 : index
    %8 = vector.load %arg6[%c0_7, %c0_8] : memref<1x384xf32, #tpu.memory_space<vmem>>, vector<1x384xf32>
    %9 = arith.addf %7, %8 : vector<1x384xf32>
    %10 = arith.truncf %5 : vector<1x128xf32> to vector<1x128xbf16>
    %c0_9 = arith.constant 0 : index
    %c0_10 = arith.constant 0 : index
    %11 = vector.load %arg5[%c0_9, %c0_10] : memref<128x384xbf16, #tpu.memory_space<vmem>>, vector<128x384xbf16>
    %cst_11 = arith.constant dense<0.000000e+00> : vector<1x384xf32>
    %12 = tpu.matmul %10, %11, %cst_11 {dimension_numbers = #tpu.dot_dimension_numbers<[1], [0], [0], [1], [0, 0, 1, 1], [], []>} : vector<1x128xbf16>, vector<128x384xbf16>, vector<1x384xf32> -> vector<1x384xf32>
    %c0_12 = arith.constant 0 : index
    %c0_13 = arith.constant 0 : index
    %13 = vector.load %arg7[%c0_12, %c0_13] : memref<1x384xf32, #tpu.memory_space<vmem>>, vector<1x384xf32>
    %14 = arith.addf %12, %13 : vector<1x384xf32>
    %15 = vector.extract_strided_slice %9 {offsets = [0, 0], sizes = [1, 128], strides = [1, 1]} : vector<1x384xf32> to vector<1x128xf32>
    %16 = vector.extract_strided_slice %9 {offsets = [0, 128], sizes = [1, 128], strides = [1, 1]} : vector<1x384xf32> to vector<1x128xf32>
    %17 = vector.extract_strided_slice %9 {offsets = [0, 256], sizes = [1, 128], strides = [1, 1]} : vector<1x384xf32> to vector<1x128xf32>
    %18 = vector.extract_strided_slice %14 {offsets = [0, 0], sizes = [1, 128], strides = [1, 1]} : vector<1x384xf32> to vector<1x128xf32>
    %19 = vector.extract_strided_slice %14 {offsets = [0, 128], sizes = [1, 128], strides = [1, 1]} : vector<1x384xf32> to vector<1x128xf32>
    %20 = vector.extract_strided_slice %14 {offsets = [0, 256], sizes = [1, 128], strides = [1, 1]} : vector<1x384xf32> to vector<1x128xf32>
    %21 = arith.addf %15, %18 : vector<1x128xf32>
    %22 = arith.negf %21 : vector<1x128xf32>
    %23 = math.exp %22 : vector<1x128xf32>
    %cst_14 = arith.constant 1.000000e+00 : f32
    %24 = vector.broadcast %cst_14 : f32 to vector<1x128xf32>
    %25 = arith.addf %24, %23 : vector<1x128xf32>
    %26 = arith.divf %24, %25 : vector<1x128xf32>
    %27 = arith.addf %16, %19 : vector<1x128xf32>
    %28 = arith.negf %27 : vector<1x128xf32>
    %29 = math.exp %28 : vector<1x128xf32>
    %cst_15 = arith.constant 1.000000e+00 : f32
    %30 = vector.broadcast %cst_15 : f32 to vector<1x128xf32>
    %31 = arith.addf %30, %29 : vector<1x128xf32>
    %32 = arith.divf %30, %31 : vector<1x128xf32>
    %33 = arith.mulf %26, %20 : vector<1x128xf32>
    %34 = arith.addf %17, %33 : vector<1x128xf32>
    %35 = math.tanh %34 : vector<1x128xf32>
    %cst_16 = arith.constant 1.000000e+00 : f32
    %36 = vector.broadcast %cst_16 : f32 to vector<1x128xf32>
    %37 = arith.subf %36, %32 : vector<1x128xf32>
    %38 = arith.mulf %37, %35 : vector<1x128xf32>
    %39 = arith.mulf %32, %5 : vector<1x128xf32>
    %40 = arith.addf %38, %39 : vector<1x128xf32>
    %c0_17 = arith.constant 0 : index
    %c0_18 = arith.constant 0 : index
    %41 = vector.load %arg9[%c0_17, %c0_18] : memref<1x128xf32, #tpu.memory_space<vmem>>, vector<1x128xf32>
    tpu.vector_store %arg9[%c0_17, %c0_18], %40 {strides = array<i32>} : memref<1x128xf32, #tpu.memory_space<vmem>>, vector<1x128xf32>,
    %c0_19 = arith.constant 0 : index
    %c0_20 = arith.constant 0 : index
    %c0_21 = arith.constant 0 : index
    %42 = vector.load %arg8[%c0_19, %c0_20, %c0_21] : memref<1x1x128xf32, #tpu.memory_space<vmem>>, vector<1x1x128xf32>
    %43 = vector.shape_cast %42 : vector<1x1x128xf32> to vector<1x128xf32>
    %44 = vector.shape_cast %40 : vector<1x128xf32> to vector<1x1x128xf32>
    tpu.vector_store %arg8[%c0_19, %c0_20, %c0_21], %44 {strides = array<i32>} : memref<1x1x128xf32, #tpu.memory_space<vmem>>, vector<1x1x128xf32>,
    return
  }
  func.func @transform_0(%arg0: i32, %arg1: memref<8xi32, #tpu.memory_space<smem>>) -> (i32, i32, i32) {
    %0 = arith.index_cast %arg0 : i32 to index
    %1 = memref.load %arg1[%0] : memref<8xi32, #tpu.memory_space<smem>>
    %c0_i32 = arith.constant 0 : i32
    %c63_i32 = arith.constant 63 : i32
    %2 = arith.maxsi %c0_i32, %1 : i32
    %3 = arith.minsi %c63_i32, %2 : i32
    %c0_i32_0 = arith.constant 0 : i32
    %c0_i32_1 = arith.constant 0 : i32
    %c0_i32_2 = arith.constant 0 : i32
    return %3, %c0_i32_0, %c0_i32_1 : i32, i32, i32
  }
  func.func @transform_1(%arg0: i32, %arg1: memref<8xi32, #tpu.memory_space<smem>>) -> (i32, i32) {
    %c0_i32 = arith.constant 0 : i32
    %c0_i32_0 = arith.constant 0 : i32
    %c0_i32_1 = arith.constant 0 : i32
    return %c0_i32, %c0_i32_0 : i32, i32
  }
  func.func @transform_2(%arg0: i32, %arg1: memref<8xi32, #tpu.memory_space<smem>>) -> (i32, i32) {
    %c0_i32 = arith.constant 0 : i32
    %c0_i32_0 = arith.constant 0 : i32
    %c0_i32_1 = arith.constant 0 : i32
    return %c0_i32, %c0_i32_0 : i32, i32
  }
  func.func @transform_3(%arg0: i32, %arg1: memref<8xi32, #tpu.memory_space<smem>>) -> (i32, i32) {
    %c0_i32 = arith.constant 0 : i32
    %c0_i32_0 = arith.constant 0 : i32
    %c0_i32_1 = arith.constant 0 : i32
    return %c0_i32, %c0_i32_0 : i32, i32
  }
  func.func @transform_4(%arg0: i32, %arg1: memref<8xi32, #tpu.memory_space<smem>>) -> (i32, i32) {
    %c0_i32 = arith.constant 0 : i32
    %c0_i32_0 = arith.constant 0 : i32
    %c0_i32_1 = arith.constant 0 : i32
    return %c0_i32, %c0_i32_0 : i32, i32
  }
  func.func @transform_5(%arg0: i32, %arg1: memref<8xi32, #tpu.memory_space<smem>>) -> (i32, i32) {
    %c0_i32 = arith.constant 0 : i32
    %c0_i32_0 = arith.constant 0 : i32
    %c0_i32_1 = arith.constant 0 : i32
    return %c0_i32, %c0_i32_0 : i32, i32
  }
  func.func @transform_6(%arg0: i32, %arg1: memref<8xi32, #tpu.memory_space<smem>>) -> (i32, i32, i32) {
    %c0_i32 = arith.constant 0 : i32
    %c0_i32_0 = arith.constant 0 : i32
    %c0_i32_1 = arith.constant 0 : i32
    return %arg0, %c0_i32, %c0_i32_0 : i32, i32, i32
  }
}

</mosaic_0001>

<bundles_post_ra>
// kernel: encoder_forward.1
= control target key start
LH: loop header
LB: loop body
LE: loop exit
PB: predicated region body
PF: predicated region fallthrough
CT: control target
= control target key end

     0   :  { %s1473_s0 = inlined_call_operand.vmem [shape: s32[8], index: 0, kind: input, shape index: {}]   ;;  %s1474_s1 = inlined_call_operand.vmem [shape: bf16[64,1,128], index: 1, kind: input, shape index: {}]   ;;  %s1475_s2 = inlined_call_operand.vmem [shape: f32[1,128], index: 2, kind: input, shape index: {}]   ;;  %s1476_s3 = inlined_call_operand.hbm [shape: bf16[128,384], index: 3, kind: input, shape index: {}]   ;;  %s1477_s4 = inlined_call_operand.hbm [shape: bf16[128,384], index: 4, kind: input, shape index: {}]   ;;  %s1478_s5 = inlined_call_operand.vmem [shape: f32[1,384], index: 5, kind: input, shape index: {}]   ;;  %s1479_s6 = inlined_call_operand.vmem [shape: f32[1,384], index: 6, kind: input, shape index: {}]   ;;  %s1480_s7 = inlined_call_operand.vmem [shape: f32[8,1,128], index: 7, kind: output, shape index: {}]  }
   0x1   :  { %s12_s26 = sshll.u32 %s1473_s0, 4  ;;  %s13_s26 = int_to_ptr.vmem [resolvable:$true] %s12_s26 }
   0x2   :  { %s1187_s27 = scalar_lea.vmem %s13_s26, 16  ;;  %p1192_p1 = scmp.lt.s32.totalorder %s13_s26, %s13_s26 }
   0x3   :  { %p1188_p0 = scmp.ne.s32.totalorder %s13_s26, %s1187_s27  ;;  %p1193_p2 = scmp.lt.s32.totalorder %s1187_s27, %s1187_s27 }
   0x5   :  { %p1194_p3 = por %p1193_p2, %p1192_p1 }
   0x7   :  { %p1195_p4 = pnand %p1194_p3, %p1188_p0 }
   0x9   :  { %1198 = shalt.err (!%p1195_p4)  }
   0xa   :  { %s1273_s28 = smov [#allocation4]  }
   0xb   :  { %15 = dma.vmem_to_smem %s13_s26, 16, %s1273_s28, [#allocation3] }
   0xc   :  { %1259 = dma.done.wait [#allocation3], 16 }
   0xd   :  { %1260 = vsyncadd [#allocation3], 4294967280 }
   0xe   :  { %17 = sfence }
   0xf   :  { %18 = vsyncpa [#allocation6], 0 }
  0x10   :  { %19 = vsyncpa [#allocation8], 0  ;;  %s1324_s29 = smov 0  }
  0x11 LB: > { %s1330_s0 = sadd.s32 4294967295, %s1271_s29   ;;  %p941_p5 = scmp.ge.s32.totalorder %s1271_s29, 1  ;;  %s1271_s29 = sphi %s1324_s29, %s25_s29  }
  0x12   : > { %p197_p6 = scmp.lt.s32.totalorder %s1271_s29, 9  ;;  %s1274_s30 = smov [#allocation5]  }
  0x13   : > { %s212_s8 = sshll.u32 %s1274_s30, 4  ;;  %p1481_p9 = scmp.eq.s32.totalorder %s1330_s0, 0  ;;  %s213_s8 = int_to_ptr.vmem [resolvable:$true] %s212_s8 }
  0x14   : > { %p1335_p8 = pnand %p941_p5, %p197_p6  ;;  %s1275_s10 = smov [#allocation7]  }
  0x15   : > { %s225_s11 = sshll.u32 %s1275_s10, 4  ;;  %s1199_s15 = scalar_lea.hbm %s1476_s3, 3072  ;;  %s1348_s11 = int_to_ptr.vmem [resolvable:$true] %s225_s11 }
  0x16   : > { %s1483_s9 = scalar_select %p1335_p8, 1, 0 }
  0x17   : > { %p1086_p10 = pneg %p1335_p8  ;;  %p1200_p12 = scmp.ne.s32.totalorder %s1476_s3, %s1199_s15 }
  0x18   : > { %p1206_p2 = scmp.lt.u32.totalorder %s1199_s15, %s1476_s3 }
  0x19   : > { %p1344_p11 = pnand %p1481_p9, %p1086_p10 }
  0x1b   : > { %p1201_p13 = pneg %p1344_p11 }
  0x1d   : > { %p1202_p0 = pnand %p1201_p13, %p1200_p12 }
  0x1f   : > { %p1203_p1 = pneg %p1202_p0 }
  0x21   : > { %p1208_p3 = pnand %p1206_p2, %p1203_p1 }
  0x23   : > { %1211 = shalt.err (!%p1208_p3)
}
  0x24   : > { %s1212_s20 = scalar_lea.vmem %s213_s8, 3072  ;;  %p1220_p10 = scmp.lt.s32.totalorder %s213_s8, %s213_s8 }
  0x25   : > { %p1213_p4 = scmp.ne.s32.totalorder %s213_s8, %s1212_s20  ;;  %p1221_p7 = scmp.lt.s32.totalorder %s1212_s20, %s1212_s20 }
  0x27   : > { %p1215_p5 = pnand %p1213_p4, %p1201_p13  ;;  %p1222_p9 = por %p1221_p7, %p1220_p10 }
  0x29   : > { %p1216_p6 = pneg %p1215_p5 }
  0x2b   : > { %p1223_p8 = pnand %p1222_p9, %p1216_p6 }
  0x2d   : > { %1226 = shalt.err (!%p1223_p8)
}
  0x2e   : > { %s1276_s21 = smov 192   ;;  %s1277_s22 = smov 12  }
  0x2f   : > { %1089 = dma.hbm_to_vmem [thread:$0]  (!%p1344_p11), %s1476_s3, 3072, %s213_s8, [#allocation6], %s1276_s21, %s1276_s21, %s1277_s22  }
  0x30   : > { %s1227_s27 = scalar_lea.hbm %s1477_s4, 3072 }
  0x31   : > { %p1228_p12 = scmp.ne.s32.totalorder %s1477_s4, %s1227_s27  ;;  %p1234_p9 = scmp.lt.u32.totalorder %s1227_s27, %s1477_s4 }
  0x33   : > { %p1230_p7 = pnand %p1228_p12, %p1201_p13 }
  0x35   : > { %p1231_p8 = pneg %p1230_p7 }
  0x37   : > { %p1236_p0 = pnand %p1234_p9, %p1231_p8 }
  0x39   : > { %1239 = shalt.err (!%p1236_p0)
}
  0x3a   : > { %s1240_s8 = scalar_lea.vmem %s1348_s11, 3072  ;;  %p1248_p4 = scmp.lt.s32.totalorder %s1348_s11, %s1348_s11 }
  0x3b   : > { %p1241_p1 = scmp.ne.s32.totalorder %s1348_s11, %s1240_s8  ;;  %p1249_p5 = scmp.lt.s32.totalorder %s1240_s8, %s1240_s8 }
  0x3d   : > { %p1243_p2 = pnand %p1241_p1, %p1201_p13  ;;  %p1250_p6 = por %p1249_p5, %p1248_p4 }
  0x3f   : > { %p1244_p3 = pneg %p1243_p2 }
  0x41   : > { %p1251_p10 = pnand %p1250_p6, %p1244_p3 }
  0x43   : > { %1254 = shalt.err (!%p1251_p10)
}
  0x44   : > { %1092 = dma.hbm_to_vmem [thread:$0]  (!%p1344_p11), %s1477_s4, 3072, %s1348_s11, [#allocation8], %s1276_s21, %s1276_s21, %s1277_s22  }
  0x45   : > { %p1485_p12 = scmp.ne.s32.totalorder %s1483_s9, 0 }
  0x46   : > { %p1486_p7 = scmp.eq.s32.totalorder (!%p1485_p12), %s1330_s0, 0 }
  0x47   : > { %263 = sbr.rel (%p1485_p12) target bundleno = 422 (0x1a6), region = 44 }
  0x4e   : > { %1262 = dma.done.wait (%p1486_p7), [#allocation6], 3072   ;;  %p1487_p13 = pmov %p1486_p7 }
  0x4f   : > { %p1488_p8 = pmov %p1486_p7 }
  0x50   : > { %1264 = vsyncadd (%p1487_p13), [#allocation6], 4294964224 }
  0x51   : > { %1266 = dma.done.wait (%p1488_p8), [#allocation8], 3072   ;;  %p1489_p9 = pmov %p1486_p7 }
  0x52   : > { %p311_p0 = scmp.lt.s32.totalorder %s1330_s0, 7  ;;  %s298_s11 = sld [smem:[#allocation4 + %s1330_s0]] }
  0x53   : > { %1268 = vsyncadd (%p1489_p9), [#allocation8], 4294964224  ;;  %p1490_p3 = scmp.ne.s32.totalorder %s1330_s0, 0 }
  0x54   : > { %s1410_s12 = scalar_select %p311_p0, %s1330_s0, 7 }
  0x55   : > { %v319_v0 = vld [vmem:[%s1475_s2] sm:$0x1] (!%p1490_p3) }
  0x56   : > { %s313_s17 = scalar_lea.vmem %s1480_s7, %s1410_s12  ;;  %320 = vst [vmem:[#allocation2] sm:$0x1] (!%p1490_p3), %v319_v0 }
  0x58   : > { %p299_p11 = scmp.gt.s32.totalorder %s298_s11, 0  ;;  %p948_p1 = scmp.lt.s32.totalorder %s298_s11, 63 }
  0x59   : > { %318 = sbr.rel (%p1490_p3) target bundleno = 96 (0x60), region = 56 }
  0x5a   : > { %s1492_s11 = smov (!%p299_p11, %s298_s11), 0 }
  0x5b   : > { %s1494_s11 = smov (!%p948_p1, %s1492_s11), 63 }
  0x5c   : > { %p303_p2 = scmp.lt.s32.totalorder %s1494_s11, 63 }
  0x5e   : > { %s1496_s11 = smov (!%p303_p2, %s1494_s11), 63 }
  0x5f   : > { %s305_s20 = scalar_lea.vmem %s1474_s1, %s1496_s11 }
  0x60 PF: > { %v1113_v1 = vld [vmem:[#allocation5 + $0x4] ss:$12 sps:$4 sm:$0xff]   ;;  %v1115_v2 = vld [vmem:[#allocation5] ss:$12 sps:$4 sm:$0xff]   ;;  %v1278_v3 = vmov 0.0   ;;  %v1279_v4 = vmov 0   ;;  %v485_v58 = vlaneseq }
  0x61   : > { %1030 = vmatprep.subr.bf16.mxu1 %v1278_v3  ;;  %532 = vmatprep.mubr.bf16.mxu0 %v1279_v4  ;;  %v1116_v5 = vld [vmem:[#allocation5 + $0x1c] ss:$12 sps:$4 sm:$0xff]   ;;  %vm1280_vm0 = vmmov 0   ;;  %v1118_v6 = vld [vmem:[#allocation5 + $0x18] ss:$12 sps:$4 sm:$0xff]  }
  0x62   : > { %500 = vmatprep.subr.bf16.mxu0 %v1113_v1  ;;  %1046 = vmatprep.mubr.msk.bf16.mxu1 %vm1280_vm0, %v1278_v3  ;;  %v1119_v7 = vld [vmem:[#allocation5 + $0x34] ss:$12 sps:$4 sm:$0xff]   ;;  %v1121_v8 = vld [vmem:[#allocation5 + $0x30] ss:$12 sps:$4 sm:$0xff]   ;;  %v1122_v9 = vld [vmem:[#allocation5 + $0x4c] ss:$12 sps:$4 sm:$0xff]  }
  0x63   : > { %501 = vmatpush1.bf16.msra.mxu0 %v1115_v2  ;;  %v1133_v10 = vld [vmem:[#allocation5 + $0x8] ss:$12 sps:$4 sm:$0xff]   ;;  %v1125_v12 = vld [vmem:[#allocation5 + $0x64] ss:$12 sps:$4 sm:$0xff]   ;;  %v1137_v13 = vld [vmem:[#allocation5 + $0x20] ss:$12 sps:$4 sm:$0xff]  }
  0x64   : > { %502 = vmatprep.subr.bf16.mxu0 %v1116_v5  ;;  %v1124_v11 = vld [vmem:[#allocation5 + $0x48] ss:$12 sps:$4 sm:$0xff]   ;;  %1031 = vmatpush3.bf16.msra.mxu1 %v1133_v10  ;;  %v1127_v14 = vld [vmem:[#allocation5 + $0x60] ss:$12 sps:$4 sm:$0xff]   ;;  %v1139_v15 = vld [vmem:[#allocation5 + $0x38] ss:$12 sps:$4 sm:$0xff]  }
  0x65   : > { %1032 = vmatprep.subr.bf16.mxu1 %v1278_v3  ;;  %v1128_v16 = vld [vmem:[#allocation5 + $0x7c] ss:$12 sps:$4 sm:$0xff]   ;;  %v1130_v17 = vld [vmem:[#allocation5 + $0x78] ss:$12 sps:$4 sm:$0xff]   ;;  %v1131_v19 = vld [vmem:[#allocation5 + $0x94] ss:$12 sps:$4 sm:$0xff]  }
  0x66   : > { %v1143_v18 = vld [vmem:[#allocation5 + $0x50] ss:$12 sps:$4 sm:$0xff]   ;;  %v1147_v21 = vld [vmem:[#allocation5 + $0x68] ss:$12 sps:$4 sm:$0xff]   ;;  %v1135_v22 = vld [vmem:[#allocation5 + $0xac] ss:$12 sps:$4 sm:$0xff]  }
  0x67   : > { %503 = vmatpush1.bf16.msra.mxu0 %v1118_v6  ;;  %v1134_v20 = vld [vmem:[#allocation5 + $0x90] ss:$12 sps:$4 sm:$0xff]   ;;  %v1138_v23 = vld [vmem:[#allocation5 + $0xa8] ss:$12 sps:$4 sm:$0xff]   ;;  %v1151_v24 = vld [vmem:[#allocation5 + $0x80] ss:$12 sps:$4 sm:$0xff]  }
  0x68   : > { %504 = vmatprep.subr.bf16.mxu0 %v1119_v7  ;;  %1033 = vmatpush3.bf16.msra.mxu1 %v1137_v13  ;;  %v1142_v25 = vld [vmem:[#allocation7 + $0x4] ss:$12 sps:$4 sm:$0xff]   ;;  %v1140_v26 = vld [vmem:[#allocation7] ss:$12 sps:$4 sm:$0xff]   ;;  %v321_v27 = vld [vmem:[%s305_s20] sm:$0x1] }
  0x69   : > { %1034 = vmatprep.subr.bf16.mxu1 %v1278_v3  ;;  %v1155_v28 = vld [vmem:[#allocation5 + $0x98] ss:$12 sps:$4 sm:$0xff]   ;;  %v1146_v29 = vld [vmem:[#allocation7 + $0x1c] ss:$12 sps:$4 sm:$0xff]   ;;  %v1150_v32 = vld [vmem:[#allocation7 + $0x34] ss:$12 sps:$4 sm:$0xff]  }
  0x6a   : > { %v1144_v30 = vld [vmem:[#allocation7 + $0x18] ss:$12 sps:$4 sm:$0xff]   ;;  %v1159_v31 = vld [vmem:[#allocation5 + $0xb0] ss:$12 sps:$4 sm:$0xff]   ;;  %v1166_v34 = vld [vmem:[#allocation7 + $0x8] ss:$12 sps:$4 sm:$0xff]  }
  0x6b   : > { %505 = vmatpush1.bf16.msra.mxu0 %v1121_v8  ;;  %v1148_v33 = vld [vmem:[#allocation7 + $0x30] ss:$12 sps:$4 sm:$0xff]   ;;  %v1154_v35 = vld [vmem:[#allocation7 + $0x4c] ss:$12 sps:$4 sm:$0xff]   ;;  %v1152_v36 = vld [vmem:[#allocation7 + $0x48] ss:$12 sps:$4 sm:$0xff]  }
  0x6c   : > { %506 = vmatprep.subr.bf16.mxu0 %v1122_v9  ;;  %1035 = vmatpush3.bf16.msra.mxu1 %v1139_v15  ;;  %v1170_v37 = vld [vmem:[#allocation7 + $0x20] ss:$12 sps:$4 sm:$0xff]   ;;  %v1158_v38 = vld [vmem:[#allocation7 + $0x64] ss:$12 sps:$4 sm:$0xff]   ;;  %v1162_v41 = vld [vmem:[#allocation7 + $0x7c] ss:$12 sps:$4 sm:$0xff]  }
  0x6d   : > { %1036 = vmatprep.subr.bf16.mxu1 %v1278_v3  ;;  %v1156_v39 = vld [vmem:[#allocation7 + $0x60] ss:$12 sps:$4 sm:$0xff]   ;;  %v1171_v40 = vld [vmem:[#allocation7 + $0x38] ss:$12 sps:$4 sm:$0xff]   ;;  %v1172_v43 = vld [vmem:[#allocation7 + $0x50] ss:$12 sps:$4 sm:$0xff]  }
  0x6e   : > { %v1160_v42 = vld [vmem:[#allocation7 + $0x78] ss:$12 sps:$4 sm:$0xff]   ;;  %v1165_v44 = vld [vmem:[#allocation7 + $0x94] ss:$12 sps:$4 sm:$0xff]   ;;  %v1163_v45 = vld [vmem:[#allocation7 + $0x90] ss:$12 sps:$4 sm:$0xff]  }
  0x6f   : > { %507 = vmatpush1.bf16.msra.mxu0 %v1124_v11  ;;  %v1173_v46 = vld [vmem:[#allocation7 + $0x68] ss:$12 sps:$4 sm:$0xff]   ;;  %v1169_v47 = vld [vmem:[#allocation7 + $0xac] ss:$12 sps:$4 sm:$0xff]   ;;  %v1451_v49 = vld [vmem:[#allocation2] sm:$0x1] }
  0x70   : > { %508 = vmatprep.subr.bf16.mxu0 %v1125_v12  ;;  %1037 = vmatpush3.bf16.msra.mxu1 %v1143_v18  ;;  %v1167_v48 = vld [vmem:[#allocation7 + $0xa8] ss:$12 sps:$4 sm:$0xff]   ;;  %v1174_v50 = vld [vmem:[#allocation7 + $0x80] ss:$12 sps:$4 sm:$0xff]   ;;  %v581_v51 = vpack.c.bf16 %v1451_v49, %v1451_v49  ;;  %v1175_v52 = vld [vmem:[#allocation7 + $0x98] ss:$12 sps:$4 sm:$0xff]  }
  0x71   : > { %1038 = vmatprep.subr.bf16.mxu1 %v1278_v3  ;;  %v1176_v53 = vld [vmem:[#allocation7 + $0xb0] ss:$12 sps:$4 sm:$0xff]   ;;  %v486_v59 = vshrl.u32 %v485_v58, 7 }
  0x72   : > { %v614_v61 = vld [vmem:[%s1479_s6] sm:$0x7] }
  0x73   : > { %509 = vmatpush1.bf16.msra.mxu0 %v1127_v14  ;;  %v487_v60 = vsub.s32 0, %v486_v59  ;;  %v355_v62 = vld [vmem:[%s1478_s5] sm:$0x7]  ;;  %v491_v63 = vsub.s32 1, %v486_v59 }
  0x74   : > { %510 = vmatprep.subr.bf16.mxu0 %v1128_v16  ;;  %1039 = vmatpush3.bf16.msra.mxu1 %v1147_v21 }
  0x75   : > { %1040 = vmatprep.subr.bf16.mxu1 %v1278_v3  ;;  %v488_v0 = vrot.slane %v355_v62, %v487_v60  ;;  %v747_v1 = vrot.slane %v614_v61, %v487_v60  ;;  %v492_v2 = vrot.slane %v355_v62, %v491_v63 }
  0x77   : > { %511 = vmatpush1.bf16.msra.mxu0 %v1130_v17 }
  0x78   : > { %512 = vmatprep.subr.bf16.mxu0 %v1131_v19  ;;  %1041 = vmatpush3.bf16.msra.mxu1 %v1151_v24 }
  0x79   : > { %1042 = vmatprep.subr.bf16.mxu1 %v1278_v3 }
  0x7b   : > { %513 = vmatpush1.bf16.msra.mxu0 %v1134_v20  ;;  %v495_v20 = vsub.s32 2, %v486_v59 }
  0x7c   : > { %514 = vmatprep.subr.bf16.mxu0 %v1135_v22  ;;  %1043 = vmatpush3.bf16.msra.mxu1 %v1155_v28 }
  0x7d   : > { %1044 = vmatprep.subr.bf16.mxu1 %v1278_v3  ;;  %v755_v21 = vrot.slane %v614_v61, %v495_v20 }
  0x7f   : > { %515 = vmatpush1.bf16.msra.mxu0 %v1138_v23  ;;  %v496_v23 = vrot.slane %v355_v62, %v495_v20 }
  0x80   : > { %759 = vmatprep.subr.bf16.mxu0 %v1142_v25  ;;  %1045 = vmatpush3.bf16.msra.mxu1 %v1159_v31 }
  0x81   : > { %1050 = vmatprep.subr.bf16.mxu1 %v1278_v3 }
  0x82   : > { %533 = vmatmul.mubr.bf16.vlgmr.msra.gmra.mrb[0].mxu0 %v321_v27 }
  0x83   : > { %760 = vmatpush1.bf16.msra.mxu0 %v1140_v26  ;;  %791 = vmatprep.mubr.bf16.mxu0 %v1279_v4  ;;  %v1070_v4 = vadd.f32 %v747_v1, %v488_v0 }
  0x84   : > { %761 = vmatprep.subr.bf16.mxu0 %v1146_v29  ;;  %1047 = vmatmul.mubr.bf16.vlgmr.msra.gmra.mrb[0].mxu1 %v321_v27 }
  0x85   : > { %1051 = vmatpush3.bf16.msra.mxu1 %v1166_v34  ;;  %1066 = vmatprep.mubr.msk.bf16.mxu1 %vm1280_vm0, %v1278_v3 }
  0x86   : > { %1052 = vmatprep.subr.bf16.mxu1 %v1278_v3 }
  0x87   : > { %762 = vmatpush1.bf16.msra.mxu0 %v1144_v30 }
  0x88   : > { %763 = vmatprep.subr.bf16.mxu0 %v1150_v32 }
  0x89   : > { %1053 = vmatpush3.bf16.msra.mxu1 %v1170_v37 }
  0x8a   : > { %1054 = vmatprep.subr.bf16.mxu1 %v1278_v3 }
  0x8b   : > { %764 = vmatpush1.bf16.msra.mxu0 %v1148_v33 }
  0x8c   : > { %765 = vmatprep.subr.bf16.mxu0 %v1154_v35 }
  0x8d   : > { %1055 = vmatpush3.bf16.msra.mxu1 %v1171_v40 }
  0x8e   : > { %1056 = vmatprep.subr.bf16.mxu1 %v1278_v3 }
  0x8f   : > { %766 = vmatpush1.bf16.msra.mxu0 %v1152_v36 }
  0x90   : > { %767 = vmatprep.subr.bf16.mxu0 %v1158_v38 }
  0x91   : > { %1057 = vmatpush3.bf16.msra.mxu1 %v1172_v43 }
  0x92   : > { %1058 = vmatprep.subr.bf16.mxu1 %v1278_v3 }
  0x93   : > { %768 = vmatpush1.bf16.msra.mxu0 %v1156_v39 }
  0x94   : > { %769 = vmatprep.subr.bf16.mxu0 %v1162_v41 }
  0x95   : > { %1059 = vmatpush3.bf16.msra.mxu1 %v1173_v46 }
  0x96   : > { %1060 = vmatprep.subr.bf16.mxu1 %v1278_v3 }
  0x97   : > { %770 = vmatpush1.bf16.msra.mxu0 %v1160_v42 }
  0x98   : > { %771 = vmatprep.subr.bf16.mxu0 %v1165_v44 }
  0x99   : > { %1061 = vmatpush3.bf16.msra.mxu1 %v1174_v50 }
  0x9a   : > { %1062 = vmatprep.subr.bf16.mxu1 %v1278_v3 }
  0x9b   : > { %772 = vmatpush1.bf16.msra.mxu0 %v1163_v45 }
  0x9c   : > { %773 = vmatprep.subr.bf16.mxu0 %v1169_v47 }
  0x9d   : > { %1063 = vmatpush3.bf16.msra.mxu1 %v1175_v52 }
  0x9e   : > { %1064 = vmatprep.subr.bf16.mxu1 %v1278_v3  ;;  %v751_v3 = vrot.slane %v614_v61, %v491_v63 }
  0x9f   : > { %774 = vmatpush1.bf16.msra.mxu0 %v1167_v48 }
  0xa0   : > { %v1072_v6 = vadd.f32 %v751_v3, %v492_v2 }
  0xa1   : > { %1065 = vmatpush3.bf16.msra.mxu1 %v1176_v53 }
  0xa2   : > { %792 = vmatmul.mubr.bf16.vlgmr.msra.gmra.mrb[0].mxu0 %v581_v51 }
  0xa4   : > { %1067 = vmatmul.mubr.bf16.vlgmr.msra.gmra.mrb[4].mxu1 %v581_v51 }
 0x157   : > { %v575_v54 = vpop.f32.mrb[0].mxu1 }
 0x158   : > { %v1048_v55 = vpop.f32.mrb[1].mxu1  ;;  %v576_v27 = vadd.f32 %v575_v54, %v496_v23 }
 0x159   : > { %v578_v56 = vpop.f32.mrb[2].mxu1 }
 0x15a   : > { %v1049_v57 = vpop.f32.mrb[3].mxu1 }
 0x175   : > { %v793_v5 = vpop.f32.mrb[0].mxu0 }
 0x176   : > { %v1071_v7 = vadd.f32 %v1070_v4, %v793_v5  ;;  %v795_v8 = vpop.f32.mrb[1].mxu0 }
 0x177   : > { %v797_v9 = vpop.f32.mrb[2].mxu0  ;;  %v1073_v12 = vadd.f32 %v1072_v6, %v795_v8  ;;  %v834_v14 = vpop.f32.mrb[4].mxu1 }
 0x178   : > { %v1002_v10 = vmul.f32 -1.442695, %v1071_v7  ;;  %v798_v11 = vpop.f32.mrb[3].mxu0  ;;  %v1068_v15 = vpop.f32.mrb[5].mxu1  ;;  %v835_v25 = vadd.f32 %v834_v14, %v755_v21 }
 0x179   : > { %v1003_v13 = vmul.f32 -1.442695, %v1073_v12  ;;  %v837_v16 = vpop.f32.mrb[6].mxu1 }
 0x17a   : > { %1177 = vpow2.f32 %v1002_v10  ;;  %v1069_v17 = vpop.f32.mrb[7].mxu1 }
 0x17b   : > { %1179 = vpow2.f32 %v1003_v13 }
 0x184   : > { %v1178_v18 = vpop.eup %1177 }
 0x185   : > { %v844_v19 = vadd.f32 1.0, %v1178_v18  ;;  %v1180_v22 = vpop.eup %1179 }
 0x186   : > { %v851_v24 = vadd.f32 1.0, %v1180_v22 }
 0x187   : > { %1181 = vrcp.f32 %v844_v19 }
 0x188   : > { %1183 = vrcp.f32 %v851_v24 }
 0x191   : > { %v1182_v26 = vpop.eup %1181 }
 0x192   : > { %v854_v28 = vmul.f32 %v1182_v26, %v835_v25  ;;  %v1184_v30 = vpop.eup %1183 }
 0x193   : > { %v857_v31 = vsub.f32 1.0, %v1184_v30  ;;  %v859_v33 = vmul.f32 %v1184_v30, %v1451_v49 }
 0x194   : > { %v855_v29 = vadd.f32 %v854_v28, %v576_v27 }
 0x196   : > { %1185 = vtanh.f32 %v855_v29 }
 0x1a0   : > { %v1186_v32 = vpop.eup %1185 }
 0x1a1   : > { %v858_v34 = vmul.f32 %v1186_v32, %v857_v31 }
 0x1a3   : > { %v860_v35 = vadd.f32 %v859_v33, %v858_v34 }
 0x1a5   : > { %861 = vst [vmem:[#allocation2] sm:$0x1] %v860_v35  ;;  %862 = vst [vmem:[%s313_s17] sm:$0x1] %v860_v35 }
 0x1a6 PF: > { %s25_s29 = sadd.s32 1, %s1271_s29  }
 0x1a7   : > { %p22_p4 = scmp.ge.s32.totalorder %s25_s29, 10  }
 0x1a9   :  { %24 = sbr.rel (!%p22_p4) target bundleno = 17 (0x11), region = 87 }
 0x1b0   :  { %880 = vsyncpa [#allocation6], 1 }
 0x1b1   :  { %882 = vsyncpa [#allocation6 + $0x1], 1 }
 0x1b2   :  { %883 = vsyncpa [#allocation8], 1 }

</bundles_post_ra>
